<compile_context>
chip_gen: v6e
topology: v6e:2x2x1
jax: 0.10.0
libtpu: 0.0.40
codegen_flags: <defaults>
</compile_context>

<pallas_src>
import functools

import jax
import jax.numpy as jnp
from jax import lax
from jax.experimental import pallas as pl
from jax.experimental.pallas import tpu as pltpu


# Debug aid: records which path served the last call ("packed" / "fallback").
_LAST_PATH = {"path": None}


def _round_up(x, m):
    return -(-x // m) * m


def _vmem_limit_bytes(requested):
    """Generation-aware scoped-VMEM limit (48 MiB on 64 MiB parts, else 100 MiB)."""
    try:
        phys = int(pltpu.get_tpu_info().vmem_capacity_bytes)
    except Exception:
        phys = 128 * 2**20
    cap = 48 * 2**20 if phys <= 64 * 2**20 else 100 * 2**20
    return int(min(cap, max(32 * 2**20, requested)))


def _choose_kc(S, Wo):
    """Smallest divisor kc of S with kc*Wo >= 128, preferring kc*Wo % 128 == 0."""
    if Wo % 128 == 0:
        return 1
    need = max(1, -(-128 // Wo))
    if S <= need:
        return S
    hi = min(S, max(need * 16, 256))
    divs = [d for d in range(need, hi + 1) if S % d == 0]
    if not divs:
        return S
    for d in divs:
        if (d * Wo) % 128 == 0:
            return d
    return divs[0]


# ---------------------------------------------------------------------------
# Primary path: lane-dense strip packing
# ---------------------------------------------------------------------------

def _plan_packed(shape, dtype, fh, fw):
    """Static tiling plan for the packed lane-dense path (None if ineligible)."""
    N, C, H, W = (int(s) for s in shape)
    Ho, Wo = H // fh, W // fw
    S = N * C * Ho                     # output row-strips
    P = fh * W                         # contiguous input elements per strip
    itemsize = jnp.dtype(dtype).itemsize

    kc = _choose_kc(S, Wo)
    if kc <= 0 or S % kc != 0:
        return None
    Win, Wout = kc * P, kc * Wo
    # Eligibility: lane-dense output (unless the whole problem is tiny),
    # clean multiple-of-8 scratch shapes, bounded unroll / packed-row width.
    if Wout < 128 and kc != S:
        return None
    if Wout % 8 != 0 or Win % 8 != 0:
        return None
    if Win > 8192 or kc * fh * fw > 256:
        return None

    Rp = S // kc
    CG = 128                           # chunk rows (lane dim of the scratch)
    if Rp < CG:
        G = CG = Rp                    # single full-extent block (always legal)
        n_chunks = 1
    else:
        row_bytes = Win * itemsize
        # ~8 MiB of input per grid step, but keep >= 2 steps once Rp > 128
        # so both v7x TensorCores get work (no effect on v5e/v6e).
        g_target = max(CG, ((8 * 2**20) // row_bytes) // CG * CG)
        G = max(CG, min(g_target, _round_up(-(-Rp // 2), CG)))
        n_chunks = G // CG
    grid = -(-Rp // G)

    in_block = G * Win * itemsize
    out_block = G * Wout * itemsize
    scratch = (Win + Wout) * max(CG, 128) * itemsize
    vmem = _vmem_limit_bytes(2 * (in_block + out_block) + scratch + 8 * 2**20)

    return dict(N=N, C=C, H=H, W=W, Ho=Ho, Wo=Wo, fh=fh, fw=fw, S=S, P=P,
                kc=kc, Win=Win, Wout=Wout, Rp=Rp, G=G, CG=CG,
                n_chunks=n_chunks, grid=grid, vmem=vmem, itemsize=itemsize)


def _make_packed_kernel(plan):
    fh, fw = plan["fh"], plan["fw"]
    W, Wo, P = plan["W"], plan["Wo"], plan["P"]
    kc = plan["kc"]
    CG, n_chunks = plan["CG"], plan["n_chunks"]

    if fw > 1:
        def win(start):                       # fw-decimated output columns
            return pl.ds(start, Wo, stride=fw)
    else:
        def win(start):
            return pl.ds(start, Wo)

    def process_chunk(x_ref, o_ref, tbuf, obuf, r0):
        # Transpose-bounce: rows -> lanes once per chunk, then the (fh, fw)
        # window gather becomes static sublane-strided reads (no lane-strided
        # access, no reshapes).  All values stream through VMEM scratch, so
        # vreg live ranges stay bounded even for multi-MiB DMA blocks.
        tbuf[...] = x_ref[pl.ds(r0, CG), :].T             # (Win, CG)
        for g in range(kc):
            base = g * P
            acc = tbuf[win(base), :]                      # (Wo, CG), (i=0, j=0)
            for i in range(fh):
                for j in range(fw):
                    if i == 0 and j == 0:
                        continue
                    acc = jnp.maximum(acc, tbuf[win(base + i * W + j), :])
            obuf[g * Wo:(g + 1) * Wo, :] = acc
        o_ref[pl.ds(r0, CG), :] = obuf[...].T             # (CG, Wout), full-lane store

    def kernel(x_ref, o_ref, tbuf, obuf):
        if n_chunks == 1:
            process_chunk(x_ref, o_ref, tbuf, obuf, 0)
        else:
            def body(c, carry):
                process_chunk(x_ref, o_ref, tbuf, obuf,
                              pl.multiple_of(c * CG, CG))
                return carry
            lax.fori_loop(0, n_chunks, body, 0)

    return kernel


def _run_packed(x, plan):
    Rp, Win, Wout = plan["Rp"], plan["Win"], plan["Wout"]
    G, CG = plan["G"], plan["CG"]
    N, C, H, W = plan["N"], plan["C"], plan["H"], plan["W"]
    Ho, Wo = plan["Ho"], plan["Wo"]

    x2 = x.reshape(Rp, Win)            # contiguous view: kc strips per packed row
    kernel = _make_packed_kernel(plan)

    out = pl.pallas_call(
        kernel,
        out_shape=jax.ShapeDtypeStruct((Rp, Wout), x.dtype),
        grid_spec=pltpu.PrefetchScalarGridSpec(
            num_scalar_prefetch=0,
            grid=(plan["grid"],),
            in_specs=[pl.BlockSpec((G, Win), lambda r: (r, 0))],
            out_specs=pl.BlockSpec((G, Wout), lambda r: (r, 0)),
            scratch_shapes=[pltpu.VMEM((Win, CG), x.dtype),
                            pltpu.VMEM((Wout, CG), x.dtype)],
        ),
        compiler_params=pltpu.CompilerParams(
            dimension_semantics=("parallel",),
            vmem_limit_bytes=plan["vmem"],
        ),
        cost_estimate=pl.CostEstimate(
            flops=N * C * H * W,
            transcendentals=0,
            bytes_accessed=(N * C * H * W + N * C * Ho * Wo) * plan["itemsize"],
        ),
    )(x2)
    return out.reshape(N, C, Ho, Wo)


# ---------------------------------------------------------------------------
# Fallback path: simple, known-good lowering (correctness safety net only).
# Its trailing (Wo, fw) dims are lane-padded, so it is used only when the
# packed path is unavailable for this dtype / factor / shape.
# ---------------------------------------------------------------------------

def _fallback_kernel(x_ref, o_ref):
    x = x_ref[...]                                        # (G, fh, Wo, fw)
    o_ref[...] = jnp.max(jnp.max(x, axis=3), axis=1)


def _downsample2d_fallback(x, factor):
    fh, fw = factor
    N, C, H, W = x.shape
    Ho, Wo = H // fh, W // fw
    R = N * C * Ho
    itemsize = jnp.dtype(x.dtype).itemsize
    sub = 8 * max(1, 4 // itemsize)                       # sublane pack: 8/16/32
    # Padded VMEM bytes per leading row of the (1, fh, Wo, fw) tile.
    padded_in_row = fh * _round_up(Wo, sub) * 128 * itemsize
    g = max(1, (2 * 2**20) // padded_in_row)
    if R > 1:
        g = min(g, max(1, -(-R // 2)))                    # >= 2 steps when possible
    G = min(g, R)
    padded_out = _round_up(G, sub) * 128 * itemsize
    vmem = _vmem_limit_bytes(2 * (G * padded_in_row + padded_out) + 8 * 2**20)

    out = pl.pallas_call(
        _fallback_kernel,
        out_shape=jax.ShapeDtypeStruct((R, Wo), x.dtype),
        grid_spec=pltpu.PrefetchScalarGridSpec(
            num_scalar_prefetch=0,
            grid=(pl.cdiv(R, G),),
            in_specs=[pl.BlockSpec((G, fh, Wo, fw), lambda r: (r, 0, 0, 0))],
            out_specs=pl.BlockSpec((G, Wo), lambda r: (r, 0)),
        ),
        compiler_params=pltpu.CompilerParams(
            dimension_semantics=("parallel",),
            vmem_limit_bytes=vmem,
        ),
    )(x.reshape(R, fh, Wo, fw))
    return out.reshape(N, C, Ho, Wo)


# ---------------------------------------------------------------------------
# One-time capability probe + public entry point
# ---------------------------------------------------------------------------

@functools.lru_cache(maxsize=None)
def _packed_supported(dtype_name, fh, fw):
    """Compile & value-check the packed path once per (dtype, factor)."""
    try:
        H, W = 8 * fh, 16 * fw
        base = (jnp.arange(2 * 3 * H * W, dtype=jnp.float32) * 37.0) % 101.0
        xp = base.reshape(2, 3, H, W).astype(jnp.dtype(dtype_name))
        plan = _plan_packed(xp.shape, xp.dtype, fh, fw)
        if plan is None:
            return False
        got = jax.block_until_ready(_run_packed(xp, plan))
        ref = xp.reshape(2, 3, H // fh, fh, W // fw, fw).max(axis=(3, 5))
        return bool(jnp.allclose(got, ref))
    except Exception:
        # Capability probe: any failure simply means "do not use this path".
        return False


def downsample(x, downsample_factor):
    """Pallas equivalent of Downsample(downsample_factor).forward(x)."""
    dims = len(downsample_factor)

    # Same divisibility check / error semantics as the PyTorch module.
    for d in range(1, dims + 1):
        if x.shape[-d] % downsample_factor[-d] != 0:
            raise RuntimeError(
                f"Can not downsample shape {x.shape} with factor "
                f"{downsample_factor}, mismatch in spatial dimension {dims - d}"
            )

    if dims != 2:
        # TODO(synk): 3-D / 4-D (MaxPool3d) factors not implemented; the same
        # strip-packing strategy generalizes by folding depth into the strips.
        raise NotImplementedError("Only 2-D downsample factors are implemented.")

    fh, fw = (int(f) for f in downsample_factor)
    if fh == 1 and fw == 1:
        return x                       # MaxPool with kernel = stride = 1 is identity

    plan = _plan_packed(x.shape, x.dtype, fh, fw)
    if plan is not None and _packed_supported(jnp.dtype(x.dtype).name, fh, fw):
        try:
            out = _run_packed(x, plan)
            _LAST_PATH["path"] = "packed"
            return out
        except pltpu.LoweringException:
            pass                       # shape-specific lowering gap -> safe path
    out = _downsample2d_fallback(x, (fh, fw))
    _LAST_PATH["path"] = "fallback"
    return out


if __name__ == "__main__":
    # Downsample has no learnable parameters; only the downsample_factor config.
    downsample_factor = (2, 2)

    key = jax.random.PRNGKey(0)
    x = jax.random.normal(key, (2, 4, 16, 16), dtype=jnp.float32)  # NCHW

    y = jax.block_until_ready(downsample(x, downsample_factor))

    # Pure-JAX reference (what MaxPool2d(kernel=stride=factor) computes).
    N, C, H, W = x.shape
    fh, fw = downsample_factor
    ref = x.reshape(N, C, H // fh, fh, W // fw, fw).max(axis=(3, 5))

    assert y.shape == (N, C, H // fh, W // fw), y.shape
    assert y.dtype == x.dtype, y.dtype
    assert jnp.allclose(y, ref), "Pallas maxpool mismatch vs reference"

    print("KERNEL_OK")
</pallas_src>

<mosaic_0001>
module attributes {stable_mosaic.version = 11 : i64} {
  func.func @kernel(%arg0: i32, %arg1: memref<6x512xf32, #tpu.memory_space<vmem>>, %arg2: memref<6x128xf32, #tpu.memory_space<vmem>>, %arg3: memref<512x6xf32, #tpu.memory_space<vmem>>, %arg4: memref<128x6xf32, #tpu.memory_space<vmem>>) attributes {dimension_semantics = [#tpu.dimension_semantics<parallel>], iteration_bounds = array<i64: 1>, scalar_prefetch = 0 : i64, scratch_operands = 2 : i64, tpu.core_type = #tpu.core_type<tc>, window_params = [{transform_indices = @transform_0, window_bounds = array<i64: 6, 512>}, {transform_indices = @transform_1, window_bounds = array<i64: 6, 128>}]} {
    %c0 = arith.constant 0 : index
    %c0_0 = arith.constant 0 : index
    %0 = vector.load %arg1[%c0, %c0_0] : memref<6x512xf32, #tpu.memory_space<vmem>>, vector<6x512xf32>
    %1 = tpu.transpose %0, [1, 0] : vector<6x512xf32> -> vector<512x6xf32>
    %c0_1 = arith.constant 0 : index
    %c0_2 = arith.constant 0 : index
    %2 = vector.load %arg3[%c0_1, %c0_2] : memref<512x6xf32, #tpu.memory_space<vmem>>, vector<512x6xf32>
    tpu.vector_store %arg3[%c0_1, %c0_2], %1 {strides = array<i32>} : memref<512x6xf32, #tpu.memory_space<vmem>>, vector<512x6xf32>,
    %c0_3 = arith.constant 0 : index
    %c0_4 = arith.constant 0 : index
    %3 = tpu.strided_load %arg3[%c0_3, %c0_4] {strides = array<i32: 2, 1>} : memref<512x6xf32, #tpu.memory_space<vmem>>, vector<16x6xf32>
    %c1 = arith.constant 1 : index
    %c0_5 = arith.constant 0 : index
    %4 = tpu.strided_load %arg3[%c1, %c0_5] {strides = array<i32: 2, 1>} : memref<512x6xf32, #tpu.memory_space<vmem>>, vector<16x6xf32>
    %5 = arith.maximumf %3, %4 : vector<16x6xf32>
    %c32 = arith.constant 32 : index
    %c0_6 = arith.constant 0 : index
    %6 = tpu.strided_load %arg3[%c32, %c0_6] {strides = array<i32: 2, 1>} : memref<512x6xf32, #tpu.memory_space<vmem>>, vector<16x6xf32>
    %7 = arith.maximumf %5, %6 : vector<16x6xf32>
    %c33 = arith.constant 33 : index
    %c0_7 = arith.constant 0 : index
    %8 = tpu.strided_load %arg3[%c33, %c0_7] {strides = array<i32: 2, 1>} : memref<512x6xf32, #tpu.memory_space<vmem>>, vector<16x6xf32>
    %9 = arith.maximumf %7, %8 : vector<16x6xf32>
    %c0_8 = arith.constant 0 : index
    %c0_9 = arith.constant 0 : index
    %10 = vector.load %arg4[%c0_8, %c0_9] : memref<128x6xf32, #tpu.memory_space<vmem>>, vector<16x6xf32>
    tpu.vector_store %arg4[%c0_8, %c0_9], %9 {strides = array<i32>} : memref<128x6xf32, #tpu.memory_space<vmem>>, vector<16x6xf32>,
    %c64 = arith.constant 64 : index
    %c0_10 = arith.constant 0 : index
    %11 = tpu.strided_load %arg3[%c64, %c0_10] {strides = array<i32: 2, 1>} : memref<512x6xf32, #tpu.memory_space<vmem>>, vector<16x6xf32>
    %c65 = arith.constant 65 : index
    %c0_11 = arith.constant 0 : index
    %12 = tpu.strided_load %arg3[%c65, %c0_11] {strides = array<i32: 2, 1>} : memref<512x6xf32, #tpu.memory_space<vmem>>, vector<16x6xf32>
    %13 = arith.maximumf %11, %12 : vector<16x6xf32>
    %c96 = arith.constant 96 : index
    %c0_12 = arith.constant 0 : index
    %14 = tpu.strided_load %arg3[%c96, %c0_12] {strides = array<i32: 2, 1>} : memref<512x6xf32, #tpu.memory_space<vmem>>, vector<16x6xf32>
    %15 = arith.maximumf %13, %14 : vector<16x6xf32>
    %c97 = arith.constant 97 : index
    %c0_13 = arith.constant 0 : index
    %16 = tpu.strided_load %arg3[%c97, %c0_13] {strides = array<i32: 2, 1>} : memref<512x6xf32, #tpu.memory_space<vmem>>, vector<16x6xf32>
    %17 = arith.maximumf %15, %16 : vector<16x6xf32>
    %c16 = arith.constant 16 : index
    %c0_14 = arith.constant 0 : index
    %18 = vector.load %arg4[%c16, %c0_14] : memref<128x6xf32, #tpu.memory_space<vmem>>, vector<16x6xf32>
    tpu.vector_store %arg4[%c16, %c0_14], %17 {strides = array<i32>} : memref<128x6xf32, #tpu.memory_space<vmem>>, vector<16x6xf32>,
    %c128 = arith.constant 128 : index
    %c0_15 = arith.constant 0 : index
    %19 = tpu.strided_load %arg3[%c128, %c0_15] {strides = array<i32: 2, 1>} : memref<512x6xf32, #tpu.memory_space<vmem>>, vector<16x6xf32>
    %c129 = arith.constant 129 : index
    %c0_16 = arith.constant 0 : index
    %20 = tpu.strided_load %arg3[%c129, %c0_16] {strides = array<i32: 2, 1>} : memref<512x6xf32, #tpu.memory_space<vmem>>, vector<16x6xf32>
    %21 = arith.maximumf %19, %20 : vector<16x6xf32>
    %c160 = arith.constant 160 : index
    %c0_17 = arith.constant 0 : index
    %22 = tpu.strided_load %arg3[%c160, %c0_17] {strides = array<i32: 2, 1>} : memref<512x6xf32, #tpu.memory_space<vmem>>, vector<16x6xf32>
    %23 = arith.maximumf %21, %22 : vector<16x6xf32>
    %c161 = arith.constant 161 : index
    %c0_18 = arith.constant 0 : index
    %24 = tpu.strided_load %arg3[%c161, %c0_18] {strides = array<i32: 2, 1>} : memref<512x6xf32, #tpu.memory_space<vmem>>, vector<16x6xf32>
    %25 = arith.maximumf %23, %24 : vector<16x6xf32>
    %c32_19 = arith.constant 32 : index
    %c0_20 = arith.constant 0 : index
    %26 = vector.load %arg4[%c32_19, %c0_20] : memref<128x6xf32, #tpu.memory_space<vmem>>, vector<16x6xf32>
    tpu.vector_store %arg4[%c32_19, %c0_20], %25 {strides = array<i32>} : memref<128x6xf32, #tpu.memory_space<vmem>>, vector<16x6xf32>,
    %c192 = arith.constant 192 : index
    %c0_21 = arith.constant 0 : index
    %27 = tpu.strided_load %arg3[%c192, %c0_21] {strides = array<i32: 2, 1>} : memref<512x6xf32, #tpu.memory_space<vmem>>, vector<16x6xf32>
    %c193 = arith.constant 193 : index
    %c0_22 = arith.constant 0 : index
    %28 = tpu.strided_load %arg3[%c193, %c0_22] {strides = array<i32: 2, 1>} : memref<512x6xf32, #tpu.memory_space<vmem>>, vector<16x6xf32>
    %29 = arith.maximumf %27, %28 : vector<16x6xf32>
    %c224 = arith.constant 224 : index
    %c0_23 = arith.constant 0 : index
    %30 = tpu.strided_load %arg3[%c224, %c0_23] {strides = array<i32: 2, 1>} : memref<512x6xf32, #tpu.memory_space<vmem>>, vector<16x6xf32>
    %31 = arith.maximumf %29, %30 : vector<16x6xf32>
    %c225 = arith.constant 225 : index
    %c0_24 = arith.constant 0 : index
    %32 = tpu.strided_load %arg3[%c225, %c0_24] {strides = array<i32: 2, 1>} : memref<512x6xf32, #tpu.memory_space<vmem>>, vector<16x6xf32>
    %33 = arith.maximumf %31, %32 : vector<16x6xf32>
    %c48 = arith.constant 48 : index
    %c0_25 = arith.constant 0 : index
    %34 = vector.load %arg4[%c48, %c0_25] : memref<128x6xf32, #tpu.memory_space<vmem>>, vector<16x6xf32>
    tpu.vector_store %arg4[%c48, %c0_25], %33 {strides = array<i32>} : memref<128x6xf32, #tpu.memory_space<vmem>>, vector<16x6xf32>,
    %c256 = arith.constant 256 : index
    %c0_26 = arith.constant 0 : index
    %35 = tpu.strided_load %arg3[%c256, %c0_26] {strides = array<i32: 2, 1>} : memref<512x6xf32, #tpu.memory_space<vmem>>, vector<16x6xf32>
    %c257 = arith.constant 257 : index
    %c0_27 = arith.constant 0 : index
    %36 = tpu.strided_load %arg3[%c257, %c0_27] {strides = array<i32: 2, 1>} : memref<512x6xf32, #tpu.memory_space<vmem>>, vector<16x6xf32>
    %37 = arith.maximumf %35, %36 : vector<16x6xf32>
    %c288 = arith.constant 288 : index
    %c0_28 = arith.constant 0 : index
    %38 = tpu.strided_load %arg3[%c288, %c0_28] {strides = array<i32: 2, 1>} : memref<512x6xf32, #tpu.memory_space<vmem>>, vector<16x6xf32>
    %39 = arith.maximumf %37, %38 : vector<16x6xf32>
    %c289 = arith.constant 289 : index
    %c0_29 = arith.constant 0 : index
    %40 = tpu.strided_load %arg3[%c289, %c0_29] {strides = array<i32: 2, 1>} : memref<512x6xf32, #tpu.memory_space<vmem>>, vector<16x6xf32>
    %41 = arith.maximumf %39, %40 : vector<16x6xf32>
    %c64_30 = arith.constant 64 : index
    %c0_31 = arith.constant 0 : index
    %42 = vector.load %arg4[%c64_30, %c0_31] : memref<128x6xf32, #tpu.memory_space<vmem>>, vector<16x6xf32>
    tpu.vector_store %arg4[%c64_30, %c0_31], %41 {strides = array<i32>} : memref<128x6xf32, #tpu.memory_space<vmem>>, vector<16x6xf32>,
    %c320 = arith.constant 320 : index
    %c0_32 = arith.constant 0 : index
    %43 = tpu.strided_load %arg3[%c320, %c0_32] {strides = array<i32: 2, 1>} : memref<512x6xf32, #tpu.memory_space<vmem>>, vector<16x6xf32>
    %c321 = arith.constant 321 : index
    %c0_33 = arith.constant 0 : index
    %44 = tpu.strided_load %arg3[%c321, %c0_33] {strides = array<i32: 2, 1>} : memref<512x6xf32, #tpu.memory_space<vmem>>, vector<16x6xf32>
    %45 = arith.maximumf %43, %44 : vector<16x6xf32>
    %c352 = arith.constant 352 : index
    %c0_34 = arith.constant 0 : index
    %46 = tpu.strided_load %arg3[%c352, %c0_34] {strides = array<i32: 2, 1>} : memref<512x6xf32, #tpu.memory_space<vmem>>, vector<16x6xf32>
    %47 = arith.maximumf %45, %46 : vector<16x6xf32>
    %c353 = arith.constant 353 : index
    %c0_35 = arith.constant 0 : index
    %48 = tpu.strided_load %arg3[%c353, %c0_35] {strides = array<i32: 2, 1>} : memref<512x6xf32, #tpu.memory_space<vmem>>, vector<16x6xf32>
    %49 = arith.maximumf %47, %48 : vector<16x6xf32>
    %c80 = arith.constant 80 : index
    %c0_36 = arith.constant 0 : index
    %50 = vector.load %arg4[%c80, %c0_36] : memref<128x6xf32, #tpu.memory_space<vmem>>, vector<16x6xf32>
    tpu.vector_store %arg4[%c80, %c0_36], %49 {strides = array<i32>} : memref<128x6xf32, #tpu.memory_space<vmem>>, vector<16x6xf32>,
    %c384 = arith.constant 384 : index
    %c0_37 = arith.constant 0 : index
    %51 = tpu.strided_load %arg3[%c384, %c0_37] {strides = array<i32: 2, 1>} : memref<512x6xf32, #tpu.memory_space<vmem>>, vector<16x6xf32>
    %c385 = arith.constant 385 : index
    %c0_38 = arith.constant 0 : index
    %52 = tpu.strided_load %arg3[%c385, %c0_38] {strides = array<i32: 2, 1>} : memref<512x6xf32, #tpu.memory_space<vmem>>, vector<16x6xf32>
    %53 = arith.maximumf %51, %52 : vector<16x6xf32>
    %c416 = arith.constant 416 : index
    %c0_39 = arith.constant 0 : index
    %54 = tpu.strided_load %arg3[%c416, %c0_39] {strides = array<i32: 2, 1>} : memref<512x6xf32, #tpu.memory_space<vmem>>, vector<16x6xf32>
    %55 = arith.maximumf %53, %54 : vector<16x6xf32>
    %c417 = arith.constant 417 : index
    %c0_40 = arith.constant 0 : index
    %56 = tpu.strided_load %arg3[%c417, %c0_40] {strides = array<i32: 2, 1>} : memref<512x6xf32, #tpu.memory_space<vmem>>, vector<16x6xf32>
    %57 = arith.maximumf %55, %56 : vector<16x6xf32>
    %c96_41 = arith.constant 96 : index
    %c0_42 = arith.constant 0 : index
    %58 = vector.load %arg4[%c96_41, %c0_42] : memref<128x6xf32, #tpu.memory_space<vmem>>, vector<16x6xf32>
    tpu.vector_store %arg4[%c96_41, %c0_42], %57 {strides = array<i32>} : memref<128x6xf32, #tpu.memory_space<vmem>>, vector<16x6xf32>,
    %c448 = arith.constant 448 : index
    %c0_43 = arith.constant 0 : index
    %59 = tpu.strided_load %arg3[%c448, %c0_43] {strides = array<i32: 2, 1>} : memref<512x6xf32, #tpu.memory_space<vmem>>, vector<16x6xf32>
    %c449 = arith.constant 449 : index
    %c0_44 = arith.constant 0 : index
    %60 = tpu.strided_load %arg3[%c449, %c0_44] {strides = array<i32: 2, 1>} : memref<512x6xf32, #tpu.memory_space<vmem>>, vector<16x6xf32>
    %61 = arith.maximumf %59, %60 : vector<16x6xf32>
    %c480 = arith.constant 480 : index
    %c0_45 = arith.constant 0 : index
    %62 = tpu.strided_load %arg3[%c480, %c0_45] {strides = array<i32: 2, 1>} : memref<512x6xf32, #tpu.memory_space<vmem>>, vector<16x6xf32>
    %63 = arith.maximumf %61, %62 : vector<16x6xf32>
    %c481 = arith.constant 481 : index
    %c0_46 = arith.constant 0 : index
    %64 = tpu.strided_load %arg3[%c481, %c0_46] {strides = array<i32: 2, 1>} : memref<512x6xf32, #tpu.memory_space<vmem>>, vector<16x6xf32>
    %65 = arith.maximumf %63, %64 : vector<16x6xf32>
    %c112 = arith.constant 112 : index
    %c0_47 = arith.constant 0 : index
    %66 = vector.load %arg4[%c112, %c0_47] : memref<128x6xf32, #tpu.memory_space<vmem>>, vector<16x6xf32>
    tpu.vector_store %arg4[%c112, %c0_47], %65 {strides = array<i32>} : memref<128x6xf32, #tpu.memory_space<vmem>>, vector<16x6xf32>,
    %c0_48 = arith.constant 0 : index
    %c0_49 = arith.constant 0 : index
    %67 = vector.load %arg4[%c0_48, %c0_49] : memref<128x6xf32, #tpu.memory_space<vmem>>, vector<128x6xf32>
    %68 = tpu.transpose %67, [1, 0] : vector<128x6xf32> -> vector<6x128xf32>
    %c0_50 = arith.constant 0 : index
    %c0_51 = arith.constant 0 : index
    %69 = vector.load %arg2[%c0_50, %c0_51] : memref<6x128xf32, #tpu.memory_space<vmem>>, vector<6x128xf32>
    tpu.vector_store %arg2[%c0_50, %c0_51], %68 {strides = array<i32>} : memref<6x128xf32, #tpu.memory_space<vmem>>, vector<6x128xf32>,
    return
  }
  func.func @transform_0(%arg0: i32) -> (i32, i32) {
    %c0_i32 = arith.constant 0 : i32
    %c0_i32_0 = arith.constant 0 : i32
    return %arg0, %c0_i32 : i32, i32
  }
  func.func @transform_1(%arg0: i32) -> (i32, i32) {
    %c0_i32 = arith.constant 0 : i32
    %c0_i32_0 = arith.constant 0 : i32
    return %arg0, %c0_i32 : i32, i32
  }
}

module attributes {stable_mosaic.version = 11 : i64} {
  func.func @_fallback_kernel(%arg0: i32, %arg1: memref<32x2x8x2xf32, #tpu.memory_space<vmem>>, %arg2: memref<32x8xf32, #tpu.memory_space<vmem>>) attributes {dimension_semantics = [#tpu.dimension_semantics<parallel>], iteration_bounds = array<i64: 2>, scalar_prefetch = 0 : i64, scratch_operands = 0 : i64, tpu.core_type = #tpu.core_type<tc>, window_params = [{transform_indices = @transform_0, window_bounds = array<i64: 32, 2, 8, 2>}, {transform_indices = @transform_1, window_bounds = array<i64: 32, 8>}]} {
    %c0 = arith.constant 0 : index
    %c0_0 = arith.constant 0 : index
    %c0_1 = arith.constant 0 : index
    %c0_2 = arith.constant 0 : index
    %0 = vector.load %arg1[%c0, %c0_0, %c0_1, %c0_2] : memref<32x2x8x2xf32, #tpu.memory_space<vmem>>, vector<32x2x8x2xf32>
    %cst = arith.constant dense<0xFF800000> : vector<32x2x8xf32>
    %1 = vector.multi_reduction <maximumf>, %0, %cst [3] : vector<32x2x8x2xf32> to vector<32x2x8xf32>
    %cst_3 = arith.constant dense<0xFF800000> : vector<32x8xf32>
    %2 = vector.multi_reduction <maximumf>, %1, %cst_3 [1] : vector<32x2x8xf32> to vector<32x8xf32>
    %c0_4 = arith.constant 0 : index
    %c0_5 = arith.constant 0 : index
    %3 = vector.load %arg2[%c0_4, %c0_5] : memref<32x8xf32, #tpu.memory_space<vmem>>, vector<32x8xf32>
    tpu.vector_store %arg2[%c0_4, %c0_5], %2 {strides = array<i32>} : memref<32x8xf32, #tpu.memory_space<vmem>>, vector<32x8xf32>,
    return
  }
  func.func @transform_0(%arg0: i32) -> (i32, i32, i32, i32) {
    %c0_i32 = arith.constant 0 : i32
    %c0_i32_0 = arith.constant 0 : i32
    %c0_i32_1 = arith.constant 0 : i32
    %c0_i32_2 = arith.constant 0 : i32
    return %arg0, %c0_i32, %c0_i32_0, %c0_i32_1 : i32, i32, i32, i32
  }
  func.func @transform_1(%arg0: i32) -> (i32, i32) {
    %c0_i32 = arith.constant 0 : i32
    %c0_i32_0 = arith.constant 0 : i32
    return %arg0, %c0_i32 : i32, i32
  }
}

</mosaic_0001>

<bundles_post_ra>
// kernel: tpu_custom_call.1
= control target key start
LH: loop header
LB: loop body
LE: loop exit
PB: predicated region body
PF: predicated region fallthrough
CT: control target
= control target key end

     0   :  { %6 = vsyncpa [#allocation5], 0  ;;  %s618_s0 = inlined_call_operand.hbm [shape: f32[6,512], index: 0, kind: input, shape index: {}]   ;;  %s619_s1 = inlined_call_operand.hbm [shape: f32[6,128], index: 1, kind: output, shape index: {}]  }
   0x1   :  { %7 = vsyncpa [#allocation6], 0  ;;  %s520_s6 = smov [#allocation4]  }
   0x2   :  { %s14_s7 = sshll.u32 %s520_s6, 4  ;;  %s15_s7 = int_to_ptr.vmem [resolvable:$true] %s14_s7 }
   0x3   :  { %s484_s8 = scalar_lea.vmem %s15_s7, 512  ;;  %p489_p1 = scmp.lt.s32.totalorder %s15_s7, %s15_s7 }
   0x4   :  { %p485_p0 = scmp.ne.s32.totalorder %s15_s7, %s484_s8  ;;  %p490_p2 = scmp.lt.s32.totalorder %s484_s8, %s484_s8 }
   0x6   :  { %p491_p3 = por %p490_p2, %p489_p1 }
   0x8   :  { %p492_p4 = pnand %p491_p3, %p485_p0 }
   0xa   :  { %495 = shalt.err (!%p492_p4)
}
   0xb   :  { %17 = dma.hbm_to_vmem [thread:$0]  %s618_s0, 512, %s15_s7, [#allocation5]  }
   0xc   :  { %516 = dma.done.wait [#allocation5], 512  }
   0xd   :  { %517 = vsyncadd [#allocation5], 4294966784  ;;  %v21_v0 = vld [vmem:[#allocation4] sm:$0x3f]  ;;  %v23_v1 = vld [vmem:[#allocation4 + $0x10] sm:$0x3f] }
   0xe   :  { %25 = vxpose.xlu0.b32.start.end [1/1] (short) %v21_v0, 128  ;;  %89 = vxpose.xlu1.b32.start.end [1/1] (short) %v23_v1, 128  ;;  %v22_v2 = vld [vmem:[#allocation4 + $0x8] sm:$0x3f]  ;;  %v24_v3 = vld [vmem:[#allocation4 + $0x18] sm:$0x3f]  ;;  %vm153_vm0 = vcmask 48128   ;;  %s521_s0 = smov [#allocation7]  }
   0xf   :  { %s464_s11 = sshll.u32 %s521_s0, 4  ;;  %s465_s11 = int_to_ptr.vmem [resolvable:$true] %s464_s11 }
  0x10   :  { %s496_s12 = scalar_lea.vmem %s465_s11, 128  ;;  %p501_p6 = scmp.lt.s32.totalorder %s465_s11, %s465_s11 }
  0x11   :  { %p497_p5 = scmp.ne.s32.totalorder %s465_s11, %s496_s12  ;;  %p502_p7 = scmp.lt.s32.totalorder %s496_s12, %s496_s12 }
  0x13   :  { %p503_p8 = por %p502_p7, %p501_p6 }
  0x15   :  { %p504_p9 = pnand %p503_p8, %p497_p5 }
  0x4b   :  { %57 = vxpose.xlu0.b32.start.end [1/1] (short) %v22_v2, 128  ;;  %121 = vxpose.xlu1.b32.start.end [1/1] (short) %v24_v3, 128 }
  0x8a   :  { %v41_v4 = vpop.trf.xlu0  ;;  %v105_v5 = vpop.trf.xlu1 }
  0x8b   :  { %154 = vst.msk [vmem:[#allocation2] sm:$0xff] %vm153_vm0, %v41_v4  ;;  %186 = vst.msk [vmem:[#allocation2 + $0x100] sm:$0xff] %vm153_vm0, %v105_v5 }
  0x8e   :  { %v42_v6 = vpop.trf.xlu0  ;;  %v106_v7 = vpop.trf.xlu1 }
  0x8f   :  { %155 = vst.msk [vmem:[#allocation2 + $0x8] sm:$0xff] %vm153_vm0, %v42_v6  ;;  %187 = vst.msk [vmem:[#allocation2 + $0x108] sm:$0xff] %vm153_vm0, %v106_v7 }
  0x92   :  { %v43_v8 = vpop.trf.xlu0  ;;  %v107_v9 = vpop.trf.xlu1 }
  0x93   :  { %156 = vst.msk [vmem:[#allocation2 + $0x10] sm:$0xff] %vm153_vm0, %v43_v8  ;;  %188 = vst.msk [vmem:[#allocation2 + $0x110] sm:$0xff] %vm153_vm0, %v107_v9 }
  0x96   :  { %v44_v10 = vpop.trf.xlu0  ;;  %v108_v11 = vpop.trf.xlu1  ;;  %v314_v16 = vld [vmem:[#allocation2 + $0x100] ss:$2 sm:$0xff]  ;;  %v318_v17 = vld [vmem:[#allocation2 + $0x101] ss:$2 sm:$0xff] }
  0x97   :  { %157 = vst.msk [vmem:[#allocation2 + $0x18] sm:$0xff] %vm153_vm0, %v44_v10  ;;  %189 = vst.msk [vmem:[#allocation2 + $0x118] sm:$0xff] %vm153_vm0, %v108_v11  ;;  %v218_v18 = vld [vmem:[#allocation2] ss:$2 sm:$0xff]  ;;  %v222_v19 = vld [vmem:[#allocation2 + $0x1] ss:$2 sm:$0xff]  ;;  %v321_v22 = vmax.f32 %v314_v16, %v318_v17 }
  0x98   :  { %v225_v23 = vmax.f32 %v218_v18, %v222_v19 }
  0x9a   :  { %v45_v12 = vpop.trf.xlu0  ;;  %v109_v13 = vpop.trf.xlu1 }
  0x9b   :  { %158 = vst.msk [vmem:[#allocation2 + $0x20] sm:$0xff] %vm153_vm0, %v45_v12  ;;  %190 = vst.msk [vmem:[#allocation2 + $0x120] sm:$0xff] %vm153_vm0, %v109_v13 }
  0x9e   :  { %v46_v14 = vpop.trf.xlu0  ;;  %v110_v15 = vpop.trf.xlu1  ;;  %v316_v32 = vld [vmem:[#allocation2 + $0x110] ss:$2 sm:$0xff]  ;;  %v320_v33 = vld [vmem:[#allocation2 + $0x111] ss:$2 sm:$0xff] }
  0x9f   :  { %159 = vst.msk [vmem:[#allocation2 + $0x28] sm:$0xff] %vm153_vm0, %v46_v14  ;;  %191 = vst.msk [vmem:[#allocation2 + $0x128] sm:$0xff] %vm153_vm0, %v110_v15  ;;  %v220_v36 = vld [vmem:[#allocation2 + $0x10] ss:$2 sm:$0xff]  ;;  %v224_v37 = vld [vmem:[#allocation2 + $0x11] ss:$2 sm:$0xff]  ;;  %v322_v40 = vmax.f32 %v316_v32, %v320_v33 }
  0xa0   :  { %v226_v41 = vmax.f32 %v220_v36, %v224_v37 }
  0xa2   :  { %v47_v20 = vpop.trf.xlu0  ;;  %v111_v21 = vpop.trf.xlu1 }
  0xa3   :  { %160 = vst.msk [vmem:[#allocation2 + $0x30] sm:$0xff] %vm153_vm0, %v47_v20  ;;  %192 = vst.msk [vmem:[#allocation2 + $0x130] sm:$0xff] %vm153_vm0, %v111_v21 }
  0xa6   :  { %v228_v24 = vld [vmem:[#allocation2 + $0x20] ss:$2 sm:$0xff]  ;;  %v48_v25 = vpop.trf.xlu0  ;;  %v112_v27 = vpop.trf.xlu1  ;;  %v330_v30 = vld [vmem:[#allocation2 + $0x121] ss:$2 sm:$0xff] }
  0xa7   :  { %v324_v26 = vld [vmem:[#allocation2 + $0x120] ss:$2 sm:$0xff]  ;;  %v231_v28 = vmax.f32 %v225_v23, %v228_v24  ;;  %161 = vst.msk [vmem:[#allocation2 + $0x38] sm:$0xff] %vm153_vm0, %v48_v25  ;;  %193 = vst.msk [vmem:[#allocation2 + $0x138] sm:$0xff] %vm153_vm0, %v112_v27  ;;  %v234_v31 = vld [vmem:[#allocation2 + $0x21] ss:$2 sm:$0xff] }
  0xa8   :  { %v327_v29 = vmax.f32 %v321_v22, %v324_v26 }
  0xa9   :  { %v237_v34 = vmax.f32 %v231_v28, %v234_v31 }
  0xaa   :  { %v333_v35 = vmax.f32 %v327_v29, %v330_v30  ;;  %v49_v38 = vpop.trf.xlu0  ;;  %v113_v39 = vpop.trf.xlu1 }
  0xab   :  { %239 = vst.msk [vmem:[#allocation3] sm:$0xff] %vm153_vm0, %v237_v34  ;;  %162 = vst.msk [vmem:[#allocation2 + $0x40] sm:$0xff] %vm153_vm0, %v49_v38 }
  0xac   :  { %335 = vst.msk [vmem:[#allocation3 + $0x40] sm:$0xff] %vm153_vm0, %v333_v35  ;;  %194 = vst.msk [vmem:[#allocation2 + $0x140] sm:$0xff] %vm153_vm0, %v113_v39 }
  0xae   :  { %v230_v42 = vld [vmem:[#allocation2 + $0x30] ss:$2 sm:$0xff]  ;;  %v50_v43 = vpop.trf.xlu0  ;;  %v114_v45 = vpop.trf.xlu1  ;;  %v332_v48 = vld [vmem:[#allocation2 + $0x131] ss:$2 sm:$0xff] }
  0xaf   :  { %v326_v44 = vld [vmem:[#allocation2 + $0x130] ss:$2 sm:$0xff]  ;;  %v232_v46 = vmax.f32 %v226_v41, %v230_v42  ;;  %163 = vst.msk [vmem:[#allocation2 + $0x48] sm:$0xff] %vm153_vm0, %v50_v43  ;;  %195 = vst.msk [vmem:[#allocation2 + $0x148] sm:$0xff] %vm153_vm0, %v114_v45  ;;  %v236_v49 = vld [vmem:[#allocation2 + $0x31] ss:$2 sm:$0xff] }
  0xb0   :  { %v328_v47 = vmax.f32 %v322_v40, %v326_v44 }
  0xb1   :  { %v238_v50 = vmax.f32 %v232_v46, %v236_v49 }
  0xb2   :  { %v334_v51 = vmax.f32 %v328_v47, %v332_v48  ;;  %v51_v52 = vpop.trf.xlu0  ;;  %v409_v53 = vld [vmem:[#allocation3] sm:$0xff]  ;;  %v115_v54 = vpop.trf.xlu1 }
  0xb3   :  { %240 = vst.msk [vmem:[#allocation3 + $0x8] sm:$0xff] %vm153_vm0, %v238_v50  ;;  %164 = vst.msk [vmem:[#allocation2 + $0x50] sm:$0xff] %vm153_vm0, %v51_v52  ;;  %425 = vxpose.xlu0.b32.start [1/16] (narrow) %v409_v53, 8 }
  0xb4   :  { %336 = vst.msk [vmem:[#allocation3 + $0x48] sm:$0xff] %vm153_vm0, %v334_v51  ;;  %196 = vst.msk [vmem:[#allocation2 + $0x150] sm:$0xff] %vm153_vm0, %v115_v54 }
  0xb6   :  { %v52_v55 = vpop.trf.xlu0  ;;  %v116_v56 = vpop.trf.xlu1  ;;  %v338_v62 = vld [vmem:[#allocation2 + $0x140] ss:$2 sm:$0xff]  ;;  %v342_v63 = vld [vmem:[#allocation2 + $0x141] ss:$2 sm:$0xff] }
  0xb7   :  { %165 = vst.msk [vmem:[#allocation2 + $0x58] sm:$0xff] %vm153_vm0, %v52_v55  ;;  %197 = vst.msk [vmem:[#allocation2 + $0x158] sm:$0xff] %vm153_vm0, %v116_v56  ;;  %v242_v0 = vld [vmem:[#allocation2 + $0x40] ss:$2 sm:$0xff]  ;;  %v246_v1 = vld [vmem:[#allocation2 + $0x41] ss:$2 sm:$0xff]  ;;  %v345_v4 = vmax.f32 %v338_v62, %v342_v63 }
  0xb8   :  { %v249_v5 = vmax.f32 %v242_v0, %v246_v1 }
  0xba   :  { %v53_v57 = vpop.trf.xlu0  ;;  %v410_v58 = vld [vmem:[#allocation3 + $0x8] sm:$0xff]  ;;  %v117_v59 = vpop.trf.xlu1 }
  0xbb   :  { %166 = vst.msk [vmem:[#allocation2 + $0x60] sm:$0xff] %vm153_vm0, %v53_v57  ;;  %426 = vxpose.xlu0.b32.cont [2/16] (narrow) %v410_v58, 8  ;;  %198 = vst.msk [vmem:[#allocation2 + $0x160] sm:$0xff] %vm153_vm0, %v117_v59 }
  0xbe   :  { %v54_v60 = vpop.trf.xlu0  ;;  %v118_v61 = vpop.trf.xlu1  ;;  %v340_v14 = vld [vmem:[#allocation2 + $0x150] ss:$2 sm:$0xff]  ;;  %v344_v15 = vld [vmem:[#allocation2 + $0x151] ss:$2 sm:$0xff] }
  0xbf   :  { %167 = vst.msk [vmem:[#allocation2 + $0x68] sm:$0xff] %vm153_vm0, %v54_v60  ;;  %199 = vst.msk [vmem:[#allocation2 + $0x168] sm:$0xff] %vm153_vm0, %v118_v61  ;;  %v244_v18 = vld [vmem:[#allocation2 + $0x50] ss:$2 sm:$0xff]  ;;  %v248_v19 = vld [vmem:[#allocation2 + $0x51] ss:$2 sm:$0xff]  ;;  %v346_v22 = vmax.f32 %v340_v14, %v344_v15 }
  0xc0   :  { %v250_v23 = vmax.f32 %v244_v18, %v248_v19 }
  0xc2   :  { %v55_v2 = vpop.trf.xlu0  ;;  %v119_v3 = vpop.trf.xlu1 }
  0xc3   :  { %168 = vst.msk [vmem:[#allocation2 + $0x70] sm:$0xff] %vm153_vm0, %v55_v2  ;;  %200 = vst.msk [vmem:[#allocation2 + $0x170] sm:$0xff] %vm153_vm0, %v119_v3 }
  0xc6   :  { %v252_v6 = vld [vmem:[#allocation2 + $0x60] ss:$2 sm:$0xff]  ;;  %v56_v7 = vpop.trf.xlu0  ;;  %v120_v9 = vpop.trf.xlu1  ;;  %v354_v12 = vld [vmem:[#allocation2 + $0x161] ss:$2 sm:$0xff] }
  0xc7   :  { %v348_v8 = vld [vmem:[#allocation2 + $0x160] ss:$2 sm:$0xff]  ;;  %v255_v10 = vmax.f32 %v249_v5, %v252_v6  ;;  %169 = vst.msk [vmem:[#allocation2 + $0x78] sm:$0xff] %vm153_vm0, %v56_v7  ;;  %201 = vst.msk [vmem:[#allocation2 + $0x178] sm:$0xff] %vm153_vm0, %v120_v9  ;;  %v258_v13 = vld [vmem:[#allocation2 + $0x61] ss:$2 sm:$0xff] }
  0xc8   :  { %v351_v11 = vmax.f32 %v345_v4, %v348_v8 }
  0xc9   :  { %v261_v16 = vmax.f32 %v255_v10, %v258_v13 }
  0xca   :  { %v357_v17 = vmax.f32 %v351_v11, %v354_v12  ;;  %v73_v20 = vpop.trf.xlu0  ;;  %v137_v21 = vpop.trf.xlu1 }
  0xcb   :  { %263 = vst.msk [vmem:[#allocation3 + $0x10] sm:$0xff] %vm153_vm0, %v261_v16  ;;  %170 = vst.msk [vmem:[#allocation2 + $0x80] sm:$0xff] %vm153_vm0, %v73_v20 }
  0xcc   :  { %359 = vst.msk [vmem:[#allocation3 + $0x50] sm:$0xff] %vm153_vm0, %v357_v17  ;;  %202 = vst.msk [vmem:[#allocation2 + $0x180] sm:$0xff] %vm153_vm0, %v137_v21 }
  0xce   :  { %v254_v24 = vld [vmem:[#allocation2 + $0x70] ss:$2 sm:$0xff]  ;;  %v74_v25 = vpop.trf.xlu0  ;;  %v138_v27 = vpop.trf.xlu1  ;;  %v356_v30 = vld [vmem:[#allocation2 + $0x171] ss:$2 sm:$0xff] }
  0xcf   :  { %v350_v26 = vld [vmem:[#allocation2 + $0x170] ss:$2 sm:$0xff]  ;;  %v256_v28 = vmax.f32 %v250_v23, %v254_v24  ;;  %171 = vst.msk [vmem:[#allocation2 + $0x88] sm:$0xff] %vm153_vm0, %v74_v25  ;;  %203 = vst.msk [vmem:[#allocation2 + $0x188] sm:$0xff] %vm153_vm0, %v138_v27  ;;  %v260_v31 = vld [vmem:[#allocation2 + $0x71] ss:$2 sm:$0xff] }
  0xd0   :  { %v352_v29 = vmax.f32 %v346_v22, %v350_v26 }
  0xd1   :  { %v262_v32 = vmax.f32 %v256_v28, %v260_v31 }
  0xd2   :  { %v358_v33 = vmax.f32 %v352_v29, %v356_v30  ;;  %v75_v34 = vpop.trf.xlu0  ;;  %v411_v35 = vld [vmem:[#allocation3 + $0x10] sm:$0xff]  ;;  %v139_v36 = vpop.trf.xlu1 }
  0xd3   :  { %264 = vst.msk [vmem:[#allocation3 + $0x18] sm:$0xff] %vm153_vm0, %v262_v32  ;;  %172 = vst.msk [vmem:[#allocation2 + $0x90] sm:$0xff] %vm153_vm0, %v75_v34  ;;  %427 = vxpose.xlu0.b32.cont [3/16] (narrow) %v411_v35, 8 }
  0xd4   :  { %360 = vst.msk [vmem:[#allocation3 + $0x58] sm:$0xff] %vm153_vm0, %v358_v33  ;;  %204 = vst.msk [vmem:[#allocation2 + $0x190] sm:$0xff] %vm153_vm0, %v139_v36 }
  0xd6   :  { %v76_v37 = vpop.trf.xlu0  ;;  %v140_v38 = vpop.trf.xlu1  ;;  %v362_v44 = vld [vmem:[#allocation2 + $0x180] ss:$2 sm:$0xff]  ;;  %v366_v45 = vld [vmem:[#allocation2 + $0x181] ss:$2 sm:$0xff] }
  0xd7   :  { %173 = vst.msk [vmem:[#allocation2 + $0x98] sm:$0xff] %vm153_vm0, %v76_v37  ;;  %205 = vst.msk [vmem:[#allocation2 + $0x198] sm:$0xff] %vm153_vm0, %v140_v38  ;;  %v266_v46 = vld [vmem:[#allocation2 + $0x80] ss:$2 sm:$0xff]  ;;  %v270_v47 = vld [vmem:[#allocation2 + $0x81] ss:$2 sm:$0xff]  ;;  %v369_v50 = vmax.f32 %v362_v44, %v366_v45 }
  0xd8   :  { %v273_v51 = vmax.f32 %v266_v46, %v270_v47 }
  0xda   :  { %v77_v39 = vpop.trf.xlu0  ;;  %v412_v40 = vld [vmem:[#allocation3 + $0x18] sm:$0xff]  ;;  %v141_v41 = vpop.trf.xlu1 }
  0xdb   :  { %174 = vst.msk [vmem:[#allocation2 + $0xa0] sm:$0xff] %vm153_vm0, %v77_v39  ;;  %428 = vxpose.xlu0.b32.cont [4/16] (narrow) %v412_v40, 8  ;;  %206 = vst.msk [vmem:[#allocation2 + $0x1a0] sm:$0xff] %vm153_vm0, %v141_v41 }
  0xde   :  { %v78_v42 = vpop.trf.xlu0  ;;  %v142_v43 = vpop.trf.xlu1  ;;  %v364_v60 = vld [vmem:[#allocation2 + $0x190] ss:$2 sm:$0xff]  ;;  %v368_v61 = vld [vmem:[#allocation2 + $0x191] ss:$2 sm:$0xff] }
  0xdf   :  { %175 = vst.msk [vmem:[#allocation2 + $0xa8] sm:$0xff] %vm153_vm0, %v78_v42  ;;  %207 = vst.msk [vmem:[#allocation2 + $0x1a8] sm:$0xff] %vm153_vm0, %v142_v43  ;;  %v268_v0 = vld [vmem:[#allocation2 + $0x90] ss:$2 sm:$0xff]  ;;  %v272_v1 = vld [vmem:[#allocation2 + $0x91] ss:$2 sm:$0xff]  ;;  %v370_v4 = vmax.f32 %v364_v60, %v368_v61 }
  0xe0   :  { %v274_v5 = vmax.f32 %v268_v0, %v272_v1  ;;  %v417_v60 = vld [vmem:[#allocation3 + $0x40] sm:$0xff]  ;;  %v418_v61 = vld [vmem:[#allocation3 + $0x48] sm:$0xff] }
  0xe2   :  { %v79_v48 = vpop.trf.xlu0  ;;  %v143_v49 = vpop.trf.xlu1 }
  0xe3   :  { %176 = vst.msk [vmem:[#allocation2 + $0xb0] sm:$0xff] %vm153_vm0, %v79_v48  ;;  %208 = vst.msk [vmem:[#allocation2 + $0x1b0] sm:$0xff] %vm153_vm0, %v143_v49 }
  0xe6   :  { %v276_v52 = vld [vmem:[#allocation2 + $0xa0] ss:$2 sm:$0xff]  ;;  %v80_v53 = vpop.trf.xlu0  ;;  %v144_v55 = vpop.trf.xlu1  ;;  %v378_v58 = vld [vmem:[#allocation2 + $0x1a1] ss:$2 sm:$0xff] }
  0xe7   :  { %v372_v54 = vld [vmem:[#allocation2 + $0x1a0] ss:$2 sm:$0xff]  ;;  %v279_v56 = vmax.f32 %v273_v51, %v276_v52  ;;  %177 = vst.msk [vmem:[#allocation2 + $0xb8] sm:$0xff] %vm153_vm0, %v80_v53  ;;  %209 = vst.msk [vmem:[#allocation2 + $0x1b8] sm:$0xff] %vm153_vm0, %v144_v55  ;;  %v282_v59 = vld [vmem:[#allocation2 + $0xa1] ss:$2 sm:$0xff] }
  0xe8   :  { %v375_v57 = vmax.f32 %v369_v50, %v372_v54 }
  0xe9   :  { %v285_v62 = vmax.f32 %v279_v56, %v282_v59 }
  0xea   :  { %v381_v63 = vmax.f32 %v375_v57, %v378_v58  ;;  %v81_v2 = vpop.trf.xlu0  ;;  %v145_v3 = vpop.trf.xlu1 }
  0xeb   :  { %287 = vst.msk [vmem:[#allocation3 + $0x20] sm:$0xff] %vm153_vm0, %v285_v62  ;;  %178 = vst.msk [vmem:[#allocation2 + $0xc0] sm:$0xff] %vm153_vm0, %v81_v2  ;;  %v419_v62 = vld [vmem:[#allocation3 + $0x50] sm:$0xff] }
  0xec   :  { %383 = vst.msk [vmem:[#allocation3 + $0x60] sm:$0xff] %vm153_vm0, %v381_v63  ;;  %210 = vst.msk [vmem:[#allocation2 + $0x1c0] sm:$0xff] %vm153_vm0, %v145_v3  ;;  %v420_v63 = vld [vmem:[#allocation3 + $0x58] sm:$0xff] }
  0xee   :  { %v278_v6 = vld [vmem:[#allocation2 + $0xb0] ss:$2 sm:$0xff]  ;;  %v82_v7 = vpop.trf.xlu0  ;;  %v146_v9 = vpop.trf.xlu1  ;;  %v380_v12 = vld [vmem:[#allocation2 + $0x1b1] ss:$2 sm:$0xff] }
  0xef   :  { %v374_v8 = vld [vmem:[#allocation2 + $0x1b0] ss:$2 sm:$0xff]  ;;  %v280_v10 = vmax.f32 %v274_v5, %v278_v6  ;;  %179 = vst.msk [vmem:[#allocation2 + $0xc8] sm:$0xff] %vm153_vm0, %v82_v7  ;;  %211 = vst.msk [vmem:[#allocation2 + $0x1c8] sm:$0xff] %vm153_vm0, %v146_v9  ;;  %v284_v13 = vld [vmem:[#allocation2 + $0xb1] ss:$2 sm:$0xff] }
  0xf0   :  { %v376_v11 = vmax.f32 %v370_v4, %v374_v8 }
  0xf1   :  { %v286_v14 = vmax.f32 %v280_v10, %v284_v13 }
  0xf2   :  { %v382_v15 = vmax.f32 %v376_v11, %v380_v12  ;;  %v83_v16 = vpop.trf.xlu0  ;;  %v413_v17 = vld [vmem:[#allocation3 + $0x20] sm:$0xff]  ;;  %v147_v18 = vpop.trf.xlu1 }
  0xf3   :  { %288 = vst.msk [vmem:[#allocation3 + $0x28] sm:$0xff] %vm153_vm0, %v286_v14  ;;  %180 = vst.msk [vmem:[#allocation2 + $0xd0] sm:$0xff] %vm153_vm0, %v83_v16  ;;  %429 = vxpose.xlu0.b32.cont [5/16] (narrow) %v413_v17, 8  ;;  %v421_v0 = vld [vmem:[#allocation3 + $0x60] sm:$0xff] }
  0xf4   :  { %384 = vst.msk [vmem:[#allocation3 + $0x68] sm:$0xff] %vm153_vm0, %v382_v15  ;;  %212 = vst.msk [vmem:[#allocation2 + $0x1d0] sm:$0xff] %vm153_vm0, %v147_v18 }
  0xf6   :  { %v84_v19 = vpop.trf.xlu0  ;;  %v148_v20 = vpop.trf.xlu1  ;;  %v386_v26 = vld [vmem:[#allocation2 + $0x1c0] ss:$2 sm:$0xff]  ;;  %v390_v27 = vld [vmem:[#allocation2 + $0x1c1] ss:$2 sm:$0xff] }
  0xf7   :  { %181 = vst.msk [vmem:[#allocation2 + $0xd8] sm:$0xff] %vm153_vm0, %v84_v19  ;;  %213 = vst.msk [vmem:[#allocation2 + $0x1d8] sm:$0xff] %vm153_vm0, %v148_v20  ;;  %v290_v28 = vld [vmem:[#allocation2 + $0xc0] ss:$2 sm:$0xff]  ;;  %v294_v29 = vld [vmem:[#allocation2 + $0xc1] ss:$2 sm:$0xff]  ;;  %v393_v32 = vmax.f32 %v386_v26, %v390_v27 }
  0xf8   :  { %v297_v33 = vmax.f32 %v290_v28, %v294_v29 }
  0xfa   :  { %v85_v21 = vpop.trf.xlu0  ;;  %v414_v22 = vld [vmem:[#allocation3 + $0x28] sm:$0xff]  ;;  %v149_v23 = vpop.trf.xlu1 }
  0xfb   :  { %182 = vst.msk [vmem:[#allocation2 + $0xe0] sm:$0xff] %vm153_vm0, %v85_v21  ;;  %430 = vxpose.xlu0.b32.cont [6/16] (narrow) %v414_v22, 8  ;;  %214 = vst.msk [vmem:[#allocation2 + $0x1e0] sm:$0xff] %vm153_vm0, %v149_v23  ;;  %v422_v1 = vld [vmem:[#allocation3 + $0x68] sm:$0xff] }
  0xfe   :  { %v86_v24 = vpop.trf.xlu0  ;;  %v150_v25 = vpop.trf.xlu1  ;;  %v388_v42 = vld [vmem:[#allocation2 + $0x1d0] ss:$2 sm:$0xff]  ;;  %v392_v43 = vld [vmem:[#allocation2 + $0x1d1] ss:$2 sm:$0xff] }
  0xff   :  { %183 = vst.msk [vmem:[#allocation2 + $0xe8] sm:$0xff] %vm153_vm0, %v86_v24  ;;  %215 = vst.msk [vmem:[#allocation2 + $0x1e8] sm:$0xff] %vm153_vm0, %v150_v25  ;;  %v292_v46 = vld [vmem:[#allocation2 + $0xd0] ss:$2 sm:$0xff]  ;;  %v296_v47 = vld [vmem:[#allocation2 + $0xd1] ss:$2 sm:$0xff]  ;;  %v394_v48 = vmax.f32 %v388_v42, %v392_v43 }
 0x100   :  { %v298_v49 = vmax.f32 %v292_v46, %v296_v47 }
 0x102   :  { %v87_v30 = vpop.trf.xlu0  ;;  %v151_v31 = vpop.trf.xlu1 }
 0x103   :  { %184 = vst.msk [vmem:[#allocation2 + $0xf0] sm:$0xff] %vm153_vm0, %v87_v30  ;;  %216 = vst.msk [vmem:[#allocation2 + $0x1f0] sm:$0xff] %vm153_vm0, %v151_v31 }
 0x106   :  { %v300_v34 = vld [vmem:[#allocation2 + $0xe0] ss:$2 sm:$0xff]  ;;  %v88_v35 = vpop.trf.xlu0  ;;  %v152_v37 = vpop.trf.xlu1  ;;  %v402_v40 = vld [vmem:[#allocation2 + $0x1e1] ss:$2 sm:$0xff] }
 0x107   :  { %v396_v36 = vld [vmem:[#allocation2 + $0x1e0] ss:$2 sm:$0xff]  ;;  %v303_v38 = vmax.f32 %v297_v33, %v300_v34  ;;  %185 = vst.msk [vmem:[#allocation2 + $0xf8] sm:$0xff] %vm153_vm0, %v88_v35  ;;  %217 = vst.msk [vmem:[#allocation2 + $0x1f8] sm:$0xff] %vm153_vm0, %v152_v37  ;;  %v306_v41 = vld [vmem:[#allocation2 + $0xe1] ss:$2 sm:$0xff] }
 0x108   :  { %v399_v39 = vmax.f32 %v393_v32, %v396_v36 }
 0x109   :  { %v309_v44 = vmax.f32 %v303_v38, %v306_v41 }
 0x10a   :  { %v405_v45 = vmax.f32 %v399_v39, %v402_v40 }
 0x10b   :  { %311 = vst.msk [vmem:[#allocation3 + $0x30] sm:$0xff] %vm153_vm0, %v309_v44 }
 0x10c   :  { %407 = vst.msk [vmem:[#allocation3 + $0x70] sm:$0xff] %vm153_vm0, %v405_v45 }
 0x10e   :  { %v302_v50 = vld [vmem:[#allocation2 + $0xf0] ss:$2 sm:$0xff]  ;;  %v404_v54 = vld [vmem:[#allocation2 + $0x1f1] ss:$2 sm:$0xff] }
 0x10f   :  { %v398_v51 = vld [vmem:[#allocation2 + $0x1f0] ss:$2 sm:$0xff]  ;;  %v304_v52 = vmax.f32 %v298_v49, %v302_v50  ;;  %v308_v55 = vld [vmem:[#allocation2 + $0xf1] ss:$2 sm:$0xff] }
 0x110   :  { %v400_v53 = vmax.f32 %v394_v48, %v398_v51 }
 0x111   :  { %v310_v56 = vmax.f32 %v304_v52, %v308_v55 }
 0x112   :  { %v406_v57 = vmax.f32 %v400_v53, %v404_v54  ;;  %v415_v58 = vld [vmem:[#allocation3 + $0x30] sm:$0xff] }
 0x113   :  { %312 = vst.msk [vmem:[#allocation3 + $0x38] sm:$0xff] %vm153_vm0, %v310_v56  ;;  %431 = vxpose.xlu0.b32.cont [7/16] (narrow) %v415_v58, 8  ;;  %v423_v2 = vld [vmem:[#allocation3 + $0x70] sm:$0xff] }
 0x114   :  { %408 = vst.msk [vmem:[#allocation3 + $0x78] sm:$0xff] %vm153_vm0, %v406_v57 }
 0x11a   :  { %v416_v59 = vld [vmem:[#allocation3 + $0x38] sm:$0xff] }
 0x11b   :  { %432 = vxpose.xlu0.b32.cont [8/16] (narrow) %v416_v59, 8  ;;  %v424_v3 = vld [vmem:[#allocation3 + $0x78] sm:$0xff] }
 0x11f   :  { %433 = vxpose.xlu0.b32.cont [9/16] (narrow) %v417_v60, 8 }
 0x123   :  { %434 = vxpose.xlu0.b32.cont [10/16] (narrow) %v418_v61, 8 }
 0x127   :  { %435 = vxpose.xlu0.b32.cont [11/16] (narrow) %v419_v62, 8 }
 0x12b   :  { %436 = vxpose.xlu0.b32.cont [12/16] (narrow) %v420_v63, 8 }
 0x12f   :  { %437 = vxpose.xlu0.b32.cont [13/16] (narrow) %v421_v0, 8 }
 0x133   :  { %438 = vxpose.xlu0.b32.cont [14/16] (narrow) %v422_v1, 8 }
 0x137   :  { %439 = vxpose.xlu0.b32.cont [15/16] (narrow) %v423_v2, 8 }
 0x13b   :  { %440 = vxpose.xlu0.b32.end [16/16] (narrow) %v424_v3, 8 }
 0x17b   :  { %v441_v4 = vpop.trf.xlu0 }
 0x17c   :  { %457 = vst [vmem:[#allocation7] sm:$0x3f] %v441_v4 }
 0x17d   :  { %507 = shalt.err (!%p504_p9)
}
 0x17e   :  { %467 = dma.vmem_to_hbm [thread:$0]  %s465_s11, 128, %s619_s1, [#allocation6]  }
 0x17f   :  { %518 = dma.done.wait [#allocation6], 128  }
 0x180   :  { %519 = vsyncadd [#allocation6], 4294967168 }
 0x181   :  { %471 = vsyncpa [#allocation5], 1 }
 0x182   :  { %472 = vsyncpa [#allocation6], 1 }

// kernel: tpu_custom_call.1
= control target key start
LH: loop header
LB: loop body
LE: loop exit
PB: predicated region body
PF: predicated region fallthrough
CT: control target
= control target key end

     0   :  { %s713_s6 = smov 0   ;;  %s1062_s0 = inlined_call_operand.vmem [shape: f32[64,2,8,2], index: 0, kind: input, shape index: {}]   ;;  %s1063_s1 = inlined_call_operand.vmem [shape: f32[64,8], index: 1, kind: output, shape index: {}]  }
   0x1 LB: > { %s674_s7 = sadd.s32 4294967295, %s701_s6   ;;  %p678_p0 = scmp.ge.s32.totalorder %s701_s6, 1  ;;  %s701_s6 = sphi %s713_s6, %s11_s6  }
   0x2   : > { %p89_p1 = scmp.lt.s32.totalorder %s701_s6, 3 }
   0x4   : > { %p90_p2 = pnand %p678_p0, %p89_p1 }
   0x5   : > { %s679_s8 = sshll.u32 (!%p90_p2), %s674_s7, 5  ;;  %s682_s13 = sshll.u32 (!%p90_p2), %s674_s7, 2 }
   0x6   : > { %93 = sbr.rel (%p90_p2) target bundleno = 284 (0x11c), region = 24  ;;  %p111_p3 = scmp.lt.s32.totalorder (!%p90_p2), %s679_s8, 63 }
   0x7   : > { %p118_p4 = scmp.lt.s32.totalorder (!%p90_p2), %s682_s13, 7 }
   0xb   : > { %s1065_s8 = smov (!%p111_p3, %s679_s8), 63  ;;  %vm187_vm0 = vcmask 15360   ;;  %vm574_vm1 = vcmask 1041409   ;;  %s1067_s13 = smov (!%p118_p4, %s682_s13), 7  ;;  %vm576_vm2 = vcmask 1042434   ;;  %vm578_vm3 = vcmask 1043459  }
   0xc   : > { %s686_s9 = sshll.u32 %s1065_s8, 4  ;;  %vm580_vm4 = vcmask 1044484   ;;  %vm582_vm5 = vcmask 1045509   ;;  %s683_s14 = sshll.u32 %s1067_s13, 3  ;;  %vm584_vm6 = vcmask 1046534   ;;  %vm586_vm7 = vcmask 1047559  }
   0xd   : > { %s726_s12 = scalar_lea.vmem %s1062_s0, %s686_s9  ;;  %s977_s17 = scalar_lea.vmem %s1063_s1, %s683_s14  ;;  %vm613_vm8 = vcmask 64512  }
   0xe   : > { %v125_v0 = vld [vmem:[%s726_s12 + $0x10] sm:$0xff]  ;;  %v123_v1 = vld [vmem:[%s726_s12] sm:$0xff]  ;;  %v126_v2 = vld [vmem:[%s726_s12 + $0x18] sm:$0xff] }
   0xf   : > { %v194_v3 = vsel %vm187_vm0, %v125_v0, -inf  ;;  %v188_v4 = vsel %vm187_vm0, %v123_v1, -inf  ;;  %v124_v5 = vld [vmem:[%s726_s12 + $0x8] sm:$0xff]  ;;  %v197_v6 = vsel %vm187_vm0, %v126_v2, -inf  ;;  %v127_v9 = vld [vmem:[%s726_s12 + $0x20] sm:$0xff]  ;;  %v130_v10 = vld [vmem:[%s726_s12 + $0x38] sm:$0xff] }
  0x10   : > { %195 = vmax.xlane.f32.xlu1 %v194_v3  ;;  %189 = vmax.xlane.f32.xlu0 %v188_v4  ;;  %v191_v7 = vsel %vm187_vm0, %v124_v5, -inf  ;;  %v128_v8 = vld [vmem:[%s726_s12 + $0x28] sm:$0xff]  ;;  %v200_v12 = vsel %vm187_vm0, %v127_v9, -inf  ;;  %v129_v13 = vld [vmem:[%s726_s12 + $0x30] sm:$0xff]  ;;  %v131_v15 = vld [vmem:[%s726_s12 + $0x40] sm:$0xff]  ;;  %v209_v18 = vsel %vm187_vm0, %v130_v10, -inf }
  0x11   : > { %v203_v11 = vsel %vm187_vm0, %v128_v8, -inf  ;;  %v132_v14 = vld [vmem:[%s726_s12 + $0x48] sm:$0xff]  ;;  %v134_v16 = vld [vmem:[%s726_s12 + $0x58] sm:$0xff]  ;;  %v133_v17 = vld [vmem:[%s726_s12 + $0x50] sm:$0xff]  ;;  %v206_v19 = vsel %vm187_vm0, %v129_v13, -inf  ;;  %v212_v21 = vsel %vm187_vm0, %v131_v15, -inf }
  0x12   : > { %v215_v20 = vsel %vm187_vm0, %v132_v14, -inf  ;;  %v174_v22 = vld [vmem:[%s726_s12 + $0x198] sm:$0xff]  ;;  %v752_v23 = vsel %vm187_vm0, %v134_v16, -inf  ;;  %v755_v24 = vsel %vm187_vm0, %v133_v17, -inf  ;;  %v173_v26 = vld [vmem:[%s726_s12 + $0x190] sm:$0xff]  ;;  %v148_v27 = vld [vmem:[%s726_s12 + $0xc8] sm:$0xff] }
  0x13   : > { %v758_v25 = vsel %vm187_vm0, %v174_v22, -inf  ;;  %v147_v28 = vld [vmem:[%s726_s12 + $0xc0] sm:$0xff]  ;;  %v764_v29 = vsel %vm187_vm0, %v173_v26, -inf  ;;  %v767_v30 = vsel %vm187_vm0, %v148_v27, -inf  ;;  %v162_v32 = vld [vmem:[%s726_s12 + $0x138] sm:$0xff]  ;;  %v161_v33 = vld [vmem:[%s726_s12 + $0x130] sm:$0xff] }
  0x14   : > { %198 = vmax.xlane.f32.xlu1 %v197_v6  ;;  %192 = vmax.xlane.f32.xlu0 %v191_v7  ;;  %v770_v31 = vsel %vm187_vm0, %v147_v28, -inf  ;;  %v176_v34 = vld [vmem:[%s726_s12 + $0x1a8] sm:$0xff]  ;;  %v776_v35 = vsel %vm187_vm0, %v162_v32, -inf  ;;  %v779_v36 = vsel %vm187_vm0, %v161_v33, -inf  ;;  %v175_v38 = vld [vmem:[%s726_s12 + $0x1a0] sm:$0xff]  ;;  %v150_v39 = vld [vmem:[%s726_s12 + $0xd8] sm:$0xff] }
  0x15   : > { %v782_v37 = vsel %vm187_vm0, %v176_v34, -inf  ;;  %v149_v40 = vld [vmem:[%s726_s12 + $0xd0] sm:$0xff]  ;;  %v788_v41 = vsel %vm187_vm0, %v175_v38, -inf  ;;  %v791_v42 = vsel %vm187_vm0, %v150_v39, -inf  ;;  %v164_v44 = vld [vmem:[%s726_s12 + $0x148] sm:$0xff]  ;;  %v163_v45 = vld [vmem:[%s726_s12 + $0x140] sm:$0xff] }
  0x16   : > { %v794_v43 = vsel %vm187_vm0, %v149_v40, -inf  ;;  %v178_v46 = vld [vmem:[%s726_s12 + $0x1b8] sm:$0xff]  ;;  %v800_v47 = vsel %vm187_vm0, %v164_v44, -inf  ;;  %v803_v48 = vsel %vm187_vm0, %v163_v45, -inf  ;;  %v177_v50 = vld [vmem:[%s726_s12 + $0x1b0] sm:$0xff]  ;;  %v152_v51 = vld [vmem:[%s726_s12 + $0xe8] sm:$0xff] }
  0x17   : > { %v806_v49 = vsel %vm187_vm0, %v178_v46, -inf  ;;  %v151_v52 = vld [vmem:[%s726_s12 + $0xe0] sm:$0xff]  ;;  %v812_v53 = vsel %vm187_vm0, %v177_v50, -inf  ;;  %v815_v54 = vsel %vm187_vm0, %v152_v51, -inf  ;;  %v166_v56 = vld [vmem:[%s726_s12 + $0x158] sm:$0xff]  ;;  %v165_v57 = vld [vmem:[%s726_s12 + $0x150] sm:$0xff] }
  0x18   : > { %204 = vmax.xlane.f32.xlu1 %v203_v11  ;;  %201 = vmax.xlane.f32.xlu0 %v200_v12  ;;  %v818_v55 = vsel %vm187_vm0, %v151_v52, -inf  ;;  %v180_v58 = vld [vmem:[%s726_s12 + $0x1c8] sm:$0xff]  ;;  %v824_v59 = vsel %vm187_vm0, %v166_v56, -inf  ;;  %v827_v60 = vsel %vm187_vm0, %v165_v57, -inf  ;;  %v179_v62 = vld [vmem:[%s726_s12 + $0x1c0] sm:$0xff]  ;;  %v154_v63 = vld [vmem:[%s726_s12 + $0xf8] sm:$0xff] }
  0x19   : > { %v830_v61 = vsel %vm187_vm0, %v180_v58, -inf  ;;  %v153_v0 = vld [vmem:[%s726_s12 + $0xf0] sm:$0xff]  ;;  %v136_v1 = vld [vmem:[%s726_s12 + $0x68] sm:$0xff]  ;;  %v135_v2 = vld [vmem:[%s726_s12 + $0x60] sm:$0xff]  ;;  %v838_v3 = vsel %vm187_vm0, %v179_v62, -inf  ;;  %v841_v4 = vsel %vm187_vm0, %v154_v63, -inf }
  0x1a   : > { %v844_v5 = vsel %vm187_vm0, %v153_v0, -inf  ;;  %v168_v6 = vld [vmem:[%s726_s12 + $0x168] sm:$0xff]  ;;  %v167_v7 = vld [vmem:[%s726_s12 + $0x160] sm:$0xff]  ;;  %v182_v8 = vld [vmem:[%s726_s12 + $0x1d8] sm:$0xff]  ;;  %v227_v32 = vsel %vm187_vm0, %v136_v1, -inf  ;;  %v224_v33 = vsel %vm187_vm0, %v135_v2, -inf }
  0x1b   : > { %v850_v9 = vsel %vm187_vm0, %v168_v6, -inf  ;;  %v853_v10 = vsel %vm187_vm0, %v167_v7, -inf  ;;  %v856_v11 = vsel %vm187_vm0, %v182_v8, -inf  ;;  %v181_v12 = vld [vmem:[%s726_s12 + $0x1d0] sm:$0xff]  ;;  %v170_v13 = vld [vmem:[%s726_s12 + $0x178] sm:$0xff]  ;;  %v139_v40 = vld [vmem:[%s726_s12 + $0x80] sm:$0xff] }
  0x1c   : > { %210 = vmax.xlane.f32.xlu1 %v209_v18  ;;  %207 = vmax.xlane.f32.xlu0 %v206_v19  ;;  %v169_v14 = vld [vmem:[%s726_s12 + $0x170] sm:$0xff]  ;;  %v862_v15 = vsel %vm187_vm0, %v181_v12, -inf  ;;  %v865_v16 = vsel %vm187_vm0, %v170_v13, -inf  ;;  %v184_v18 = vld [vmem:[%s726_s12 + $0x1e8] sm:$0xff]  ;;  %v183_v19 = vld [vmem:[%s726_s12 + $0x1e0] sm:$0xff]  ;;  %v236_v45 = vsel %vm187_vm0, %v139_v40, -inf }
  0x1d   : > { %v868_v17 = vsel %vm187_vm0, %v169_v14, -inf  ;;  %v877_v22 = vsel %vm187_vm0, %v183_v19, -inf  ;;  %v185_v27 = vld [vmem:[%s726_s12 + $0x1f0] sm:$0xff]  ;;  %v138_v34 = vld [vmem:[%s726_s12 + $0x78] sm:$0xff]  ;;  %v144_v56 = vld [vmem:[%s726_s12 + $0xa8] sm:$0xff] }
  0x1e   : > { %v886_v28 = vsel %vm187_vm0, %v185_v27, -inf  ;;  %v137_v38 = vld [vmem:[%s726_s12 + $0x70] sm:$0xff]  ;;  %v233_v39 = vsel %vm187_vm0, %v138_v34, -inf  ;;  %v142_v46 = vld [vmem:[%s726_s12 + $0x98] sm:$0xff]  ;;  %v143_v57 = vld [vmem:[%s726_s12 + $0xa0] sm:$0xff]  ;;  %v251_v58 = vsel %vm187_vm0, %v144_v56, -inf }
  0x1f   : > { %v141_v50 = vld [vmem:[%s726_s12 + $0x90] sm:$0xff]  ;;  %v245_v51 = vsel %vm187_vm0, %v142_v46, -inf  ;;  %v248_v62 = vsel %vm187_vm0, %v143_v57, -inf  ;;  %v155_v63 = vld [vmem:[%s726_s12 + $0x100] sm:$0xff]  ;;  %v156_v7 = vld [vmem:[%s726_s12 + $0x108] sm:$0xff] }
  0x20   : > { %216 = vmax.xlane.f32.xlu1 %v215_v20  ;;  %213 = vmax.xlane.f32.xlu0 %v212_v21  ;;  %v186_v20 = vld [vmem:[%s726_s12 + $0x1f8] sm:$0xff]  ;;  %v874_v21 = vsel %vm187_vm0, %v184_v18, -inf  ;;  %v242_v52 = vsel %vm187_vm0, %v141_v50, -inf  ;;  %v145_v0 = vld [vmem:[%s726_s12 + $0xb0] sm:$0xff]  ;;  %v284_v1 = vsel %vm187_vm0, %v155_v63, -inf  ;;  %v287_v12 = vsel %vm187_vm0, %v156_v7, -inf }
  0x21   : > { %v880_v26 = vsel %vm187_vm0, %v186_v20, -inf  ;;  %v254_v2 = vsel %vm187_vm0, %v145_v0, -inf  ;;  %v157_v6 = vld [vmem:[%s726_s12 + $0x110] sm:$0xff]  ;;  %v146_v13 = vld [vmem:[%s726_s12 + $0xb8] sm:$0xff]  ;;  %v160_v20 = vld [vmem:[%s726_s12 + $0x128] sm:$0xff] }
  0x22   : > { %v290_v8 = vsel %vm187_vm0, %v157_v6, -inf  ;;  %v158_v14 = vld [vmem:[%s726_s12 + $0x118] sm:$0xff]  ;;  %v257_v18 = vsel %vm187_vm0, %v146_v13, -inf  ;;  %v159_v27 = vld [vmem:[%s726_s12 + $0x120] sm:$0xff]  ;;  %v172_v34 = vld [vmem:[%s726_s12 + $0x188] sm:$0xff] }
  0x23   : > { %v293_v19 = vsel %vm187_vm0, %v158_v14, -inf }
  0x24   : > { %222 = vmax.xlane.f32.xlu1 %v752_v23  ;;  %219 = vmax.xlane.f32.xlu0 %v755_v24  ;;  %v230_v23 = vsel %vm187_vm0, %v137_v38, -inf  ;;  %v140_v24 = vld [vmem:[%s726_s12 + $0x88] sm:$0xff]  ;;  %v171_v38 = vld [vmem:[%s726_s12 + $0x180] sm:$0xff] }
  0x25   : > { %v239_v44 = vsel %vm187_vm0, %v140_v24, -inf }
  0x28   : > { %228 = vmax.xlane.f32.xlu1 %v227_v32  ;;  %225 = vmax.xlane.f32.xlu0 %v224_v33  ;;  %v299_v32 = vsel %vm187_vm0, %v160_v20, -inf  ;;  %v296_v33 = vsel %vm187_vm0, %v159_v27, -inf }
  0x2c   : > { %234 = vmax.xlane.f32.xlu1 %v233_v39  ;;  %231 = vmax.xlane.f32.xlu0 %v230_v23  ;;  %v335_v39 = vsel %vm187_vm0, %v172_v34, -inf  ;;  %v332_v23 = vsel %vm187_vm0, %v171_v38, -inf }
  0x30   : > { %240 = vmax.xlane.f32.xlu1 %v239_v44  ;;  %237 = vmax.xlane.f32.xlu0 %v236_v45 }
  0x34   : > { %246 = vmax.xlane.f32.xlu1 %v245_v51  ;;  %243 = vmax.xlane.f32.xlu0 %v242_v52 }
  0x38   : > { %252 = vmax.xlane.f32.xlu1 %v251_v58  ;;  %249 = vmax.xlane.f32.xlu0 %v248_v62 }
  0x3c   : > { %285 = vmax.xlane.f32.xlu1 %v284_v1  ;;  %255 = vmax.xlane.f32.xlu0 %v254_v2 }
  0x40   : > { %291 = vmax.xlane.f32.xlu1 %v290_v8  ;;  %288 = vmax.xlane.f32.xlu0 %v287_v12 }
  0x44   : > { %258 = vmax.xlane.f32.xlu1 %v257_v18  ;;  %294 = vmax.xlane.f32.xlu0 %v293_v19 }
  0x48   : > { %300 = vmax.xlane.f32.xlu1 %v299_v32  ;;  %297 = vmax.xlane.f32.xlu0 %v296_v33 }
  0x4c   : > { %336 = vmax.xlane.f32.xlu1 %v335_v39  ;;  %333 = vmax.xlane.f32.xlu0 %v332_v23 }
  0x50   : > { %342 = vmax.xlane.f32.xlu1 %v758_v25  ;;  %339 = vmax.xlane.f32.xlu0 %v764_v29 }
  0x54   : > { %264 = vmax.xlane.f32.xlu1 %v767_v30  ;;  %261 = vmax.xlane.f32.xlu0 %v770_v31 }
  0x58   : > { %306 = vmax.xlane.f32.xlu1 %v776_v35  ;;  %303 = vmax.xlane.f32.xlu0 %v779_v36 }
  0x5c   : > { %348 = vmax.xlane.f32.xlu1 %v782_v37  ;;  %345 = vmax.xlane.f32.xlu0 %v788_v41  ;;  %v444_v37 = vlaneseq }
  0x60   : > { %270 = vmax.xlane.f32.xlu1 %v791_v42  ;;  %267 = vmax.xlane.f32.xlu0 %v794_v43  ;;  %v445_v43 = vand.u32 127, %v444_v37 }
  0x64   : > { %312 = vmax.xlane.f32.xlu1 %v800_v47  ;;  %309 = vmax.xlane.f32.xlu0 %v803_v48  ;;  %v447_v47 = vshrl.u32 %v444_v37, 7 }
  0x68   : > { %354 = vmax.xlane.f32.xlu1 %v806_v49  ;;  %351 = vmax.xlane.f32.xlu0 %v812_v53  ;;  %v960_v53 = vsub.s32 %v445_v43, %v447_v47 }
  0x6c   : > { %276 = vmax.xlane.f32.xlu1 %v815_v54  ;;  %273 = vmax.xlane.f32.xlu0 %v818_v55 }
  0x70   : > { %318 = vmax.xlane.f32.xlu1 %v824_v59  ;;  %315 = vmax.xlane.f32.xlu0 %v827_v60 }
  0x74   : > { %360 = vmax.xlane.f32.xlu1 %v830_v61  ;;  %357 = vmax.xlane.f32.xlu0 %v838_v3 }
  0x78   : > { %282 = vmax.xlane.f32.xlu1 %v841_v4  ;;  %279 = vmax.xlane.f32.xlu0 %v844_v5 }
  0x7c   : > { %324 = vmax.xlane.f32.xlu1 %v850_v9  ;;  %321 = vmax.xlane.f32.xlu0 %v853_v10 }
  0x80   : > { %366 = vmax.xlane.f32.xlu1 %v856_v11  ;;  %363 = vmax.xlane.f32.xlu0 %v862_v15 }
  0x84   : > { %330 = vmax.xlane.f32.xlu1 %v865_v16  ;;  %327 = vmax.xlane.f32.xlu0 %v868_v17 }
  0x88   : > { %372 = vmax.xlane.f32.xlu1 %v874_v21  ;;  %369 = vmax.xlane.f32.xlu0 %v877_v22 }
  0x8c   : > { %378 = vmax.xlane.f32.xlu1 %v880_v26  ;;  %375 = vmax.xlane.f32.xlu0 %v886_v28 }
  0x99   : > { %v196_v25 = vpop.xlane.xlu1 %195  ;;  %v190_v29 = vpop.xlane.xlu0 %189 }
  0x9d   : > { %v199_v30 = vpop.xlane.xlu1 %198  ;;  %v193_v31 = vpop.xlane.xlu0 %192 }
  0x9e   : > { %v381_v54 = vmax.f32 %v196_v25, %v199_v30  ;;  %v380_v55 = vmax.f32 %v190_v29, %v193_v31 }
  0xa0   : > { %v453_v5 = vrot.slane %v381_v54, %v960_v53  ;;  %v449_v9 = vrot.slane %v380_v55, %v960_v53 }
  0xa1   : > { %v205_v35 = vpop.xlane.xlu1 %204  ;;  %v202_v36 = vpop.xlane.xlu0 %201 }
  0xa2   : > { %v382_v59 = vmax.f32 %v202_v36, %v205_v35  ;;  %v575_v26 = vsel %vm574_vm1, %v453_v5, %v449_v9 }
  0xa4   : > { %v457_v11 = vrot.slane %v382_v59, %v960_v53 }
  0xa5   : > { %v211_v41 = vpop.xlane.xlu1 %210  ;;  %v208_v42 = vpop.xlane.xlu0 %207 }
  0xa6   : > { %v383_v3 = vmax.f32 %v208_v42, %v211_v41  ;;  %v577_v24 = vsel %vm576_vm2, %v457_v11, %v575_v26 }
  0xa8   : > { %v461_v17 = vrot.slane %v383_v3, %v960_v53 }
  0xa9   : > { %v217_v48 = vpop.xlane.xlu1 %216  ;;  %v214_v49 = vpop.xlane.xlu0 %213 }
  0xaa   : > { %v384_v4 = vmax.f32 %v214_v49, %v217_v48  ;;  %v579_v46 = vsel %vm578_vm3, %v461_v17, %v577_v24 }
  0xac   : > { %v465_v22 = vrot.slane %v384_v4, %v960_v53 }
  0xad   : > { %v223_v60 = vpop.xlane.xlu1 %222  ;;  %v220_v61 = vpop.xlane.xlu0 %219 }
  0xae   : > { %v385_v10 = vmax.f32 %v220_v61, %v223_v60  ;;  %v581_v51 = vsel %vm580_vm4, %v465_v22, %v579_v46 }
  0xb0   : > { %v469_v28 = vrot.slane %v385_v10, %v960_v53 }
  0xb1   : > { %v229_v15 = vpop.xlane.xlu1 %228  ;;  %v226_v16 = vpop.xlane.xlu0 %225 }
  0xb2   : > { %v386_v21 = vmax.f32 %v226_v16, %v229_v15  ;;  %v583_v52 = vsel %vm582_vm5, %v469_v28, %v581_v51 }
  0xb4   : > { %v473_v40 = vrot.slane %v386_v21, %v960_v53 }
  0xb5   : > { %v235_v44 = vpop.xlane.xlu1 %234  ;;  %v232_v45 = vpop.xlane.xlu0 %231 }
  0xb6   : > { %v387_v50 = vmax.f32 %v232_v45, %v235_v44  ;;  %v585_v57 = vsel %vm584_vm6, %v473_v40, %v583_v52 }
  0xb8   : > { %v477_v56 = vrot.slane %v387_v50, %v960_v53 }
  0xb9   : > { %v241_v58 = vpop.xlane.xlu1 %240  ;;  %v238_v62 = vpop.xlane.xlu0 %237 }
  0xba   : > { %v587_v63 = vsel %vm586_vm7, %v477_v56, %v585_v57  ;;  %v388_v0 = vmax.f32 %v238_v62, %v241_v58 }
  0xbb   : > { %614 = vst.msk [vmem:[%s977_s17] sm:$0xff] %vm613_vm8, %v587_v63 }
  0xbc   : > { %v481_v7 = vrot.slane %v388_v0, %v960_v53 }
  0xbd   : > { %v247_v1 = vpop.xlane.xlu1 %246  ;;  %v244_v2 = vpop.xlane.xlu0 %243 }
  0xbe   : > { %v389_v6 = vmax.f32 %v244_v2, %v247_v1 }
  0xc0   : > { %v485_v8 = vrot.slane %v389_v6, %v960_v53 }
  0xc1   : > { %v253_v12 = vpop.xlane.xlu1 %252  ;;  %v250_v13 = vpop.xlane.xlu0 %249 }
  0xc2   : > { %v588_v14 = vsel %vm574_vm1, %v485_v8, %v481_v7  ;;  %v390_v9 = vmax.f32 %v250_v13, %v253_v12 }
  0xc4   : > { %v489_v21 = vrot.slane %v390_v9, %v960_v53 }
  0xc5   : > { %v286_v18 = vpop.xlane.xlu1 %285  ;;  %v256_v19 = vpop.xlane.xlu0 %255 }
  0xc6   : > { %v589_v45 = vsel %vm576_vm2, %v489_v21, %v588_v14 }
  0xc9   : > { %v292_v20 = vpop.xlane.xlu1 %291  ;;  %v289_v27 = vpop.xlane.xlu0 %288 }
  0xca   : > { %v396_v32 = vmax.f32 %v286_v18, %v289_v27 }
  0xcc   : > { %v513_v39 = vrot.slane %v396_v32, %v960_v53 }
  0xcd   : > { %v259_v33 = vpop.xlane.xlu1 %258  ;;  %v295_v34 = vpop.xlane.xlu0 %294 }
  0xce   : > { %v397_v38 = vmax.f32 %v292_v20, %v295_v34  ;;  %v391_v15 = vmax.f32 %v256_v19, %v259_v33 }
  0xd0   : > { %v517_v23 = vrot.slane %v397_v38, %v960_v53  ;;  %v493_v24 = vrot.slane %v391_v15, %v960_v53 }
  0xd1   : > { %v301_v25 = vpop.xlane.xlu1 %300  ;;  %v298_v29 = vpop.xlane.xlu0 %297 }
  0xd2   : > { %v595_v30 = vsel %vm574_vm1, %v517_v23, %v513_v39  ;;  %v590_v52 = vsel %vm578_vm3, %v493_v24, %v589_v45  ;;  %v398_v63 = vmax.f32 %v298_v29, %v301_v25 }
  0xd4   : > { %v521_v13 = vrot.slane %v398_v63, %v960_v53 }
  0xd5   : > { %v990_v31 = vpop.xlane.xlu1 %336  ;;  %v992_v35 = vpop.xlane.xlu0 %333 }
  0xd6   : > { %v596_v34 = vsel %vm576_vm2, %v521_v13, %v595_v30  ;;  %v404_v29 = vmax.f32 %v992_v35, %v990_v31 }
  0xd9   : > { %v994_v36 = vpop.xlane.xlu1 %342  ;;  %v996_v37 = vpop.xlane.xlu0 %339 }
  0xda   : > { %v405_v32 = vmax.f32 %v996_v37, %v994_v36 }
  0xdd   : > { %v265_v41 = vpop.xlane.xlu1 %264  ;;  %v262_v42 = vpop.xlane.xlu0 %261 }
  0xde   : > { %v392_v16 = vmax.f32 %v262_v42, %v265_v41 }
  0xe0   : > { %v497_v40 = vrot.slane %v392_v16, %v960_v53 }
  0xe1   : > { %v307_v43 = vpop.xlane.xlu1 %306  ;;  %v304_v47 = vpop.xlane.xlu0 %303 }
  0xe2   : > { %v591_v57 = vsel %vm580_vm4, %v497_v40, %v590_v52  ;;  %v399_v6 = vmax.f32 %v304_v47, %v307_v43  ;;  %v549_v43 = vrot.slane %v405_v32, %v960_v53 }
  0xe4   : > { %v525_v20 = vrot.slane %v399_v6, %v960_v53 }
  0xe5   : > { %v998_v48 = vpop.xlane.xlu1 %348  ;;  %v1000_v49 = vpop.xlane.xlu0 %345 }
  0xe6   : > { %v406_v38 = vmax.f32 %v1000_v49, %v998_v48  ;;  %v597_v41 = vsel %vm578_vm3, %v525_v20, %v596_v34 }
  0xe9   : > { %v271_v54 = vpop.xlane.xlu1 %270  ;;  %v268_v55 = vpop.xlane.xlu0 %267 }
  0xea   : > { %v393_v17 = vmax.f32 %v268_v55, %v271_v54  ;;  %v553_v54 = vrot.slane %v406_v38, %v960_v53 }
  0xec   : > { %v501_v44 = vrot.slane %v393_v17, %v960_v53 }
  0xed   : > { %v313_v59 = vpop.xlane.xlu1 %312  ;;  %v310_v60 = vpop.xlane.xlu0 %309 }
  0xee   : > { %v592_v58 = vsel %vm582_vm5, %v501_v44, %v591_v57  ;;  %v400_v8 = vmax.f32 %v310_v60, %v313_v59  ;;  %v545_v59 = vrot.slane %v404_v29, %v960_v53 }
  0xf0   : > { %v529_v27 = vrot.slane %v400_v8, %v960_v53 }
  0xf1   : > { %v1002_v61 = vpop.xlane.xlu1 %354  ;;  %v1004_v3 = vpop.xlane.xlu0 %351 }
  0xf2   : > { %v407_v42 = vmax.f32 %v1004_v3, %v1002_v61  ;;  %v598_v37 = vsel %vm580_vm4, %v529_v27, %v597_v41 }
  0xf4   : > { %v557_v60 = vrot.slane %v407_v42, %v960_v53 }
  0xf5   : > { %v277_v4 = vpop.xlane.xlu1 %276  ;;  %v274_v5 = vpop.xlane.xlu0 %273 }
  0xf6   : > { %v394_v22 = vmax.f32 %v274_v5, %v277_v4  ;;  %v602_v5 = vsel %vm574_vm1, %v549_v43, %v545_v59 }
  0xf8   : > { %v505_v46 = vrot.slane %v394_v22, %v960_v53 }
  0xf9   : > { %v319_v10 = vpop.xlane.xlu1 %318  ;;  %v316_v11 = vpop.xlane.xlu0 %315 }
  0xfa   : > { %v593_v0 = vsel %vm584_vm6, %v505_v46, %v592_v58  ;;  %v401_v12 = vmax.f32 %v316_v11, %v319_v10  ;;  %v603_v10 = vsel %vm576_vm2, %v553_v54, %v602_v5 }
  0xfb   : > { %v604_v17 = vsel %vm578_vm3, %v557_v60, %v603_v10 }
  0xfc   : > { %v533_v33 = vrot.slane %v401_v12, %v960_v53 }
  0xfd   : > { %v361_v26 = vpop.xlane.xlu1 %360  ;;  %v358_v28 = vpop.xlane.xlu0 %357 }
  0xfe   : > { %v408_v30 = vmax.f32 %v358_v28, %v361_v26  ;;  %v599_v47 = vsel %vm582_vm5, %v533_v33, %v598_v37 }
 0x100   : > { %v561_v4 = vrot.slane %v408_v30, %v960_v53 }
 0x101   : > { %v283_v50 = vpop.xlane.xlu1 %282  ;;  %v280_v51 = vpop.xlane.xlu0 %279 }
 0x102   : > { %v395_v56 = vmax.f32 %v280_v51, %v283_v50  ;;  %v605_v22 = vsel %vm580_vm4, %v561_v4, %v604_v17 }
 0x104   : > { %v509_v62 = vrot.slane %v395_v56, %v960_v53 }
 0x105   : > { %v325_v1 = vpop.xlane.xlu1 %324  ;;  %v322_v2 = vpop.xlane.xlu0 %321 }
 0x106   : > { %v594_v7 = vsel %vm586_vm7, %v509_v62, %v593_v0  ;;  %v402_v14 = vmax.f32 %v322_v2, %v325_v1 }
 0x107   : > { %615 = vst.msk [vmem:[%s977_s17 + $0x8] sm:$0xff] %vm613_vm8, %v594_v7 }
 0x108   : > { %v537_v39 = vrot.slane %v402_v14, %v960_v53 }
 0x109   : > { %v367_v18 = vpop.xlane.xlu1 %366  ;;  %v364_v19 = vpop.xlane.xlu0 %363 }
 0x10a   : > { %v409_v48 = vmax.f32 %v364_v19, %v367_v18  ;;  %v600_v31 = vsel %vm584_vm6, %v537_v39, %v599_v47 }
 0x10c   : > { %v565_v9 = vrot.slane %v409_v48, %v960_v53 }
 0x10d   : > { %v331_v23 = vpop.xlane.xlu1 %330  ;;  %v328_v25 = vpop.xlane.xlu0 %327 }
 0x10e   : > { %v403_v36 = vmax.f32 %v328_v25, %v331_v23  ;;  %v606_v26 = vsel %vm582_vm5, %v565_v9, %v605_v22 }
 0x110   : > { %v541_v49 = vrot.slane %v403_v36, %v960_v53 }
 0x111   : > { %v373_v35 = vpop.xlane.xlu1 %372  ;;  %v370_v55 = vpop.xlane.xlu0 %369 }
 0x112   : > { %v601_v61 = vsel %vm586_vm7, %v541_v49, %v600_v31  ;;  %v410_v3 = vmax.f32 %v370_v55, %v373_v35 }
 0x113   : > { %616 = vst.msk [vmem:[%s977_s17 + $0x10] sm:$0xff] %vm613_vm8, %v601_v61 }
 0x114   : > { %v569_v11 = vrot.slane %v410_v3, %v960_v53 }
 0x115   : > { %v379_v15 = vpop.xlane.xlu1 %378  ;;  %v376_v16 = vpop.xlane.xlu0 %375 }
 0x116   : > { %v411_v21 = vmax.f32 %v376_v16, %v379_v15  ;;  %v607_v24 = vsel %vm584_vm6, %v569_v11, %v606_v26 }
 0x118   : > { %v573_v28 = vrot.slane %v411_v21, %v960_v53 }
 0x11a   : > { %v608_v40 = vsel %vm586_vm7, %v573_v28, %v607_v24 }
 0x11b   : > { %617 = vst.msk [vmem:[%s977_s17 + $0x18] sm:$0xff] %vm613_vm8, %v608_v40 }
 0x11c PF: > { %s11_s6 = sadd.s32 1, %s701_s6  }
 0x11d   : > { %p8_p5 = scmp.ge.s32.totalorder %s11_s6, 4  }
 0x11f   :  { %10 = sbr.rel (!%p8_p5) target bundleno = 1 (0x1), region = 54 }

</bundles_post_ra>
